<compile_context>
chip_gen: v7x
topology: tpu7x:2x2x1
jax: 0.10.0
libtpu: 0.0.40
codegen_flags: <defaults>
</compile_context>

<pallas_src>
import functools

import jax
import jax.numpy as jnp
from jax import lax
from jax.experimental import pallas as pl
from jax.experimental.pallas import tpu as pltpu


def _conv_gelu_kernel(x_ref, w_ref, b_ref, o_ref, *, stride, padding):
    # x_ref: (1, H, W)          raw input image (one batch element, C=1)
    # w_ref: (KH, W, OW*OCp)    column-gather-folded conv weight
    # b_ref: (1, OW*OCp)        bias replicated per output column
    # o_ref: (1, OH, OW*OCp)    fused conv+GELU output
    x = x_ref[0]                                  # (H, W)
    H = x.shape[0]
    KH = w_ref.shape[0]
    OH = o_ref.shape[1]
    OWOC = o_ref.shape[2]

    # Row-selection indices (hoisted out of the kh loop).
    oh_ids = lax.broadcasted_iota(jnp.int32, (OH, H), 0)
    h_ids = lax.broadcasted_iota(jnp.int32, (OH, H), 1)

    acc = jnp.zeros((OH, OWOC), jnp.float32)
    for kh in range(KH):                          # static, fully unrolled
        # A_kh[oh, h] = 1  iff  h == stride*oh + kh - padding   (absorbs zero padding)
        sel = (h_ids == stride * oh_ids + (kh - padding)).astype(jnp.float32)
        rows = jnp.dot(sel, x, preferred_element_type=jnp.float32)        # (OH, W)
        acc = acc + jnp.dot(rows, w_ref[kh], preferred_element_type=jnp.float32)

    v1 = acc + b_ref[...]                         # conv output (padded oc lanes are 0)
    # Fused tanh-GELU: 0.5*v1*(1 + tanh(c0*v1 + (0.044715*c0)*v1^3))
    c0 = 0.7978845608028654
    c1 = 0.044715 * c0
    t = v1 * c0 + (v1 * v1 * v1) * c1
    o_ref[0] = (0.5 * v1) * (1.0 + jnp.tanh(t))


def _round_up(x, m):
    return (x + m - 1) // m * m


def _prepare_weights(weight, bias, *, W, OW, stride, padding, oc_pad):
    """Fold the column (lane-axis) gather and OC padding into the conv weight."""
    OC, C, KH, KW = weight.shape
    w3 = weight.reshape(OC, KH, KW).astype(jnp.float32)          # C == 1
    wp = jnp.arange(W)[:, None, None]                            # input column (unpadded)
    ow = jnp.arange(OW)[None, :, None]
    kw = jnp.arange(KW)[None, None, :]
    # mask[w, ow, kw] = 1 iff input col w feeds output col ow at kernel pos kw
    mask = (wp + padding == stride * ow + kw).astype(jnp.float32)  # (W, OW, KW)
    # wsel[kh, w, ow, oc] = sum_kw mask[w, ow, kw] * w3[oc, kh, kw]
    wsel = jnp.einsum("wok,chk->hwoc", mask, w3)                 # (KH, W, OW, OC)
    wsel = jnp.pad(wsel, ((0, 0), (0, 0), (0, 0), (0, oc_pad - OC)))
    wsel = wsel.reshape(KH, W, OW * oc_pad)
    b_row = jnp.pad(bias.astype(jnp.float32), (0, oc_pad - OC))
    b_row = jnp.tile(b_row, OW)[None, :]                         # (1, OW*oc_pad)
    return wsel, b_row


def conv2d_gelu_pallas(x, weight, bias, *, stride, padding):
    """x: (N, 1, H, W) f32; weight: (OC, 1, KH, KW); bias: (OC,)."""
    N, C, H, W = x.shape
    OC, _, KH, KW = weight.shape
    OH = (H + 2 * padding - KH) // stride + 1
    OW = (W + 2 * padding - KW) // stride + 1
    oc_pad = _round_up(OC, 8)          # 14 -> 16  ->  OW*oc_pad = 128 lanes (lane-dense)
    OWOC = OW * oc_pad

    x2 = x.reshape(N, H, W)            # C == 1
    wsel, b_row = _prepare_weights(weight, bias, W=W, OW=OW,
                                   stride=stride, padding=padding, oc_pad=oc_pad)

    flops = N * (2 * KH * OH * H * W + 2 * KH * OH * W * OWOC + 10 * OH * OWOC)
    transcendentals = N * OH * OWOC
    bytes_accessed = 4 * (N * H * W + KH * W * OWOC + OWOC + N * OH * OWOC)

    kernel = functools.partial(_conv_gelu_kernel, stride=stride, padding=padding)
    out_flat = pl.pallas_call(
        kernel,
        out_shape=jax.ShapeDtypeStruct((N, OH, OWOC), jnp.float32),
        grid=(N,),
        in_specs=[
            pl.BlockSpec((1, H, W), lambda n: (n, 0, 0)),
            pl.BlockSpec((KH, W, OWOC), lambda n: (0, 0, 0)),
            pl.BlockSpec((1, OWOC), lambda n: (0, 0)),
        ],
        out_specs=pl.BlockSpec((1, OH, OWOC), lambda n: (n, 0, 0)),
        compiler_params=pltpu.CompilerParams(dimension_semantics=("parallel",)),
        cost_estimate=pl.CostEstimate(flops=int(flops),
                                      transcendentals=int(transcendentals),
                                      bytes_accessed=int(bytes_accessed)),
    )(x2, wsel, b_row)

    # (N, OH, OW*oc_pad) -> NCHW (tiny output-side rearrange; input path is fully fused)
    out = out_flat.reshape(N, OH, OW, oc_pad)[..., :OC].transpose(0, 3, 1, 2)
    return out


def reference(x, weight, bias, *, stride, padding):
    v1 = lax.conv_general_dilated(
        x, weight, window_strides=(stride, stride),
        padding=[(padding, padding), (padding, padding)],
        dimension_numbers=("NCHW", "OIHW", "NCHW"),
    ) + bias[None, :, None, None]
    v2 = v1 * 0.5
    v4 = v1 * v1 * v1
    v7 = (v1 + v4 * 0.044715) * 0.7978845608028654
    return v2 * (jnp.tanh(v7) + 1.0)


if __name__ == "__main__":
    key = jax.random.PRNGKey(0)
    k_x, k_w, k_b = jax.random.split(key, 3)

    N, C, H, W = 2, 1, 16, 16
    OC, K, stride, padding = 14, 4, 2, 1

    x = jax.random.normal(k_x, (N, C, H, W), jnp.float32)
    fan_in = C * K * K
    bound = 1.0 / (fan_in ** 0.5)
    weight = jax.random.uniform(k_w, (OC, C, K, K), jnp.float32, -bound, bound)
    bias = jax.random.uniform(k_b, (OC,), jnp.float32, -bound, bound)

    fn = jax.jit(functools.partial(conv2d_gelu_pallas, stride=stride, padding=padding))
    out = jax.block_until_ready(fn(x, weight, bias))

    ref = jax.block_until_ready(reference(x, weight, bias, stride=stride, padding=padding))
    OH = (H + 2 * padding - K) // stride + 1
    assert out.shape == ref.shape == (N, OC, OH, OH)
    assert jnp.allclose(out, ref, atol=1e-4, rtol=1e-4), float(jnp.max(jnp.abs(out - ref)))

    print("KERNEL_OK")
</pallas_src>

<mosaic_0001>
module attributes {stable_mosaic.version = 11 : i64} {
  func.func @_conv_gelu_kernel(%arg0: i32, %arg1: memref<1x16x16xf32, #tpu.memory_space<vmem>>, %arg2: memref<4x16x128xf32, #tpu.memory_space<vmem>>, %arg3: memref<1x128xf32, #tpu.memory_space<vmem>>, %arg4: memref<1x8x128xf32, #tpu.memory_space<vmem>>) attributes {dimension_semantics = [#tpu.dimension_semantics<parallel>], iteration_bounds = array<i64: 2>, scalar_prefetch = 0 : i64, scratch_operands = 0 : i64, tpu.core_type = #tpu.core_type<tc>, window_params = [{transform_indices = @transform_0, window_bounds = array<i64: 1, 16, 16>}, {pipeline_mode = #tpu.pipeline_mode<synchronous>, transform_indices = @transform_1, window_bounds = array<i64: 4, 16, 128>}, {pipeline_mode = #tpu.pipeline_mode<synchronous>, transform_indices = @transform_2, window_bounds = array<i64: 1, 128>}, {transform_indices = @transform_3, window_bounds = array<i64: 1, 8, 128>}]} {
    %c0 = arith.constant 0 : index
    %c0_0 = arith.constant 0 : index
    %c0_1 = arith.constant 0 : index
    %0 = vector.load %arg1[%c0, %c0_0, %c0_1] : memref<1x16x16xf32, #tpu.memory_space<vmem>>, vector<1x16x16xf32>
    %1 = vector.shape_cast %0 : vector<1x16x16xf32> to vector<16x16xf32>
    %2 = tpu.iota {dimensions = array<i32: 0>} : vector<8x16xi32>
    %3 = tpu.iota {dimensions = array<i32: 1>} : vector<8x16xi32>
    %cst = arith.constant 0.000000e+00 : f32
    %4 = vector.broadcast %cst : f32 to vector<8x128xf32>
    %c2_i32 = arith.constant 2 : i32
    %5 = vector.broadcast %c2_i32 : i32 to vector<8x16xi32>
    %6 = arith.muli %5, %2 : vector<8x16xi32>
    %c-1_i32 = arith.constant -1 : i32
    %7 = vector.broadcast %c-1_i32 : i32 to vector<8x16xi32>
    %8 = arith.addi %6, %7 : vector<8x16xi32>
    %9 = arith.cmpi eq, %3, %8 : vector<8x16xi32>
    %10 = arith.extui %9 : vector<8x16xi1> to vector<8x16xi32>
    %11 = arith.sitofp %10 : vector<8x16xi32> to vector<8x16xf32>
    %cst_2 = arith.constant dense<0.000000e+00> : vector<8x16xf32>
    %12 = tpu.matmul %11, %1, %cst_2 {dimension_numbers = #tpu.dot_dimension_numbers<[1], [0], [0], [1], [0, 0, 1, 1], [], []>} : vector<8x16xf32>, vector<16x16xf32>, vector<8x16xf32> -> vector<8x16xf32>
    %c0_3 = arith.constant 0 : index
    %c0_4 = arith.constant 0 : index
    %c0_5 = arith.constant 0 : index
    %13 = vector.load %arg2[%c0_3, %c0_4, %c0_5] : memref<4x16x128xf32, #tpu.memory_space<vmem>>, vector<1x16x128xf32>
    %14 = vector.shape_cast %13 : vector<1x16x128xf32> to vector<16x128xf32>
    %cst_6 = arith.constant dense<0.000000e+00> : vector<8x128xf32>
    %15 = tpu.matmul %12, %14, %cst_6 {dimension_numbers = #tpu.dot_dimension_numbers<[1], [0], [0], [1], [0, 0, 1, 1], [], []>} : vector<8x16xf32>, vector<16x128xf32>, vector<8x128xf32> -> vector<8x128xf32>
    %16 = arith.addf %4, %15 : vector<8x128xf32>
    %c2_i32_7 = arith.constant 2 : i32
    %17 = vector.broadcast %c2_i32_7 : i32 to vector<8x16xi32>
    %18 = arith.muli %17, %2 : vector<8x16xi32>
    %c0_i32 = arith.constant 0 : i32
    %19 = vector.broadcast %c0_i32 : i32 to vector<8x16xi32>
    %20 = arith.addi %18, %19 : vector<8x16xi32>
    %21 = arith.cmpi eq, %3, %20 : vector<8x16xi32>
    %22 = arith.extui %21 : vector<8x16xi1> to vector<8x16xi32>
    %23 = arith.sitofp %22 : vector<8x16xi32> to vector<8x16xf32>
    %cst_8 = arith.constant dense<0.000000e+00> : vector<8x16xf32>
    %24 = tpu.matmul %23, %1, %cst_8 {dimension_numbers = #tpu.dot_dimension_numbers<[1], [0], [0], [1], [0, 0, 1, 1], [], []>} : vector<8x16xf32>, vector<16x16xf32>, vector<8x16xf32> -> vector<8x16xf32>
    %c1 = arith.constant 1 : index
    %c0_9 = arith.constant 0 : index
    %c0_10 = arith.constant 0 : index
    %25 = vector.load %arg2[%c1, %c0_9, %c0_10] : memref<4x16x128xf32, #tpu.memory_space<vmem>>, vector<1x16x128xf32>
    %26 = vector.shape_cast %25 : vector<1x16x128xf32> to vector<16x128xf32>
    %cst_11 = arith.constant dense<0.000000e+00> : vector<8x128xf32>
    %27 = tpu.matmul %24, %26, %cst_11 {dimension_numbers = #tpu.dot_dimension_numbers<[1], [0], [0], [1], [0, 0, 1, 1], [], []>} : vector<8x16xf32>, vector<16x128xf32>, vector<8x128xf32> -> vector<8x128xf32>
    %28 = arith.addf %16, %27 : vector<8x128xf32>
    %c2_i32_12 = arith.constant 2 : i32
    %29 = vector.broadcast %c2_i32_12 : i32 to vector<8x16xi32>
    %30 = arith.muli %29, %2 : vector<8x16xi32>
    %c1_i32 = arith.constant 1 : i32
    %31 = vector.broadcast %c1_i32 : i32 to vector<8x16xi32>
    %32 = arith.addi %30, %31 : vector<8x16xi32>
    %33 = arith.cmpi eq, %3, %32 : vector<8x16xi32>
    %34 = arith.extui %33 : vector<8x16xi1> to vector<8x16xi32>
    %35 = arith.sitofp %34 : vector<8x16xi32> to vector<8x16xf32>
    %cst_13 = arith.constant dense<0.000000e+00> : vector<8x16xf32>
    %36 = tpu.matmul %35, %1, %cst_13 {dimension_numbers = #tpu.dot_dimension_numbers<[1], [0], [0], [1], [0, 0, 1, 1], [], []>} : vector<8x16xf32>, vector<16x16xf32>, vector<8x16xf32> -> vector<8x16xf32>
    %c2 = arith.constant 2 : index
    %c0_14 = arith.constant 0 : index
    %c0_15 = arith.constant 0 : index
    %37 = vector.load %arg2[%c2, %c0_14, %c0_15] : memref<4x16x128xf32, #tpu.memory_space<vmem>>, vector<1x16x128xf32>
    %38 = vector.shape_cast %37 : vector<1x16x128xf32> to vector<16x128xf32>
    %cst_16 = arith.constant dense<0.000000e+00> : vector<8x128xf32>
    %39 = tpu.matmul %36, %38, %cst_16 {dimension_numbers = #tpu.dot_dimension_numbers<[1], [0], [0], [1], [0, 0, 1, 1], [], []>} : vector<8x16xf32>, vector<16x128xf32>, vector<8x128xf32> -> vector<8x128xf32>
    %40 = arith.addf %28, %39 : vector<8x128xf32>
    %c2_i32_17 = arith.constant 2 : i32
    %41 = vector.broadcast %c2_i32_17 : i32 to vector<8x16xi32>
    %42 = arith.muli %41, %2 : vector<8x16xi32>
    %c2_i32_18 = arith.constant 2 : i32
    %43 = vector.broadcast %c2_i32_18 : i32 to vector<8x16xi32>
    %44 = arith.addi %42, %43 : vector<8x16xi32>
    %45 = arith.cmpi eq, %3, %44 : vector<8x16xi32>
    %46 = arith.extui %45 : vector<8x16xi1> to vector<8x16xi32>
    %47 = arith.sitofp %46 : vector<8x16xi32> to vector<8x16xf32>
    %cst_19 = arith.constant dense<0.000000e+00> : vector<8x16xf32>
    %48 = tpu.matmul %47, %1, %cst_19 {dimension_numbers = #tpu.dot_dimension_numbers<[1], [0], [0], [1], [0, 0, 1, 1], [], []>} : vector<8x16xf32>, vector<16x16xf32>, vector<8x16xf32> -> vector<8x16xf32>
    %c3 = arith.constant 3 : index
    %c0_20 = arith.constant 0 : index
    %c0_21 = arith.constant 0 : index
    %49 = vector.load %arg2[%c3, %c0_20, %c0_21] : memref<4x16x128xf32, #tpu.memory_space<vmem>>, vector<1x16x128xf32>
    %50 = vector.shape_cast %49 : vector<1x16x128xf32> to vector<16x128xf32>
    %cst_22 = arith.constant dense<0.000000e+00> : vector<8x128xf32>
    %51 = tpu.matmul %48, %50, %cst_22 {dimension_numbers = #tpu.dot_dimension_numbers<[1], [0], [0], [1], [0, 0, 1, 1], [], []>} : vector<8x16xf32>, vector<16x128xf32>, vector<8x128xf32> -> vector<8x128xf32>
    %52 = arith.addf %40, %51 : vector<8x128xf32>
    %c0_23 = arith.constant 0 : index
    %c0_24 = arith.constant 0 : index
    %53 = vector.load %arg3[%c0_23, %c0_24] : memref<1x128xf32, #tpu.memory_space<vmem>>, vector<1x128xf32>
    %54 = vector.broadcast %53 : vector<1x128xf32> to vector<8x128xf32>
    %55 = arith.addf %52, %54 : vector<8x128xf32>
    %cst_25 = arith.constant 0.797884583 : f32
    %56 = vector.broadcast %cst_25 : f32 to vector<8x128xf32>
    %57 = arith.mulf %55, %56 : vector<8x128xf32>
    %58 = arith.mulf %55, %55 : vector<8x128xf32>
    %59 = arith.mulf %58, %55 : vector<8x128xf32>
    %cst_26 = arith.constant 0.0356774069 : f32
    %60 = vector.broadcast %cst_26 : f32 to vector<8x128xf32>
    %61 = arith.mulf %59, %60 : vector<8x128xf32>
    %62 = arith.addf %57, %61 : vector<8x128xf32>
    %cst_27 = arith.constant 5.000000e-01 : f32
    %63 = vector.broadcast %cst_27 : f32 to vector<8x128xf32>
    %64 = arith.mulf %63, %55 : vector<8x128xf32>
    %65 = math.tanh %62 : vector<8x128xf32>
    %cst_28 = arith.constant 1.000000e+00 : f32
    %66 = vector.broadcast %cst_28 : f32 to vector<8x128xf32>
    %67 = arith.addf %66, %65 : vector<8x128xf32>
    %68 = arith.mulf %64, %67 : vector<8x128xf32>
    %c0_29 = arith.constant 0 : index
    %c0_30 = arith.constant 0 : index
    %c0_31 = arith.constant 0 : index
    %69 = vector.load %arg4[%c0_29, %c0_30, %c0_31] : memref<1x8x128xf32, #tpu.memory_space<vmem>>, vector<1x8x128xf32>
    %70 = vector.shape_cast %69 : vector<1x8x128xf32> to vector<8x128xf32>
    %71 = vector.shape_cast %68 : vector<8x128xf32> to vector<1x8x128xf32>
    tpu.vector_store %arg4[%c0_29, %c0_30, %c0_31], %71 {strides = array<i32>} : memref<1x8x128xf32, #tpu.memory_space<vmem>>, vector<1x8x128xf32>,
    return
  }
  func.func @transform_0(%arg0: i32) -> (i32, i32, i32) {
    %c0_i32 = arith.constant 0 : i32
    %c0_i32_0 = arith.constant 0 : i32
    %c0_i32_1 = arith.constant 0 : i32
    return %arg0, %c0_i32, %c0_i32_0 : i32, i32, i32
  }
  func.func @transform_1(%arg0: i32) -> (i32, i32, i32) {
    %c0_i32 = arith.constant 0 : i32
    %c0_i32_0 = arith.constant 0 : i32
    %c0_i32_1 = arith.constant 0 : i32
    %c0_i32_2 = arith.constant 0 : i32
    return %c0_i32, %c0_i32_0, %c0_i32_1 : i32, i32, i32
  }
  func.func @transform_2(%arg0: i32) -> (i32, i32) {
    %c0_i32 = arith.constant 0 : i32
    %c0_i32_0 = arith.constant 0 : i32
    %c0_i32_1 = arith.constant 0 : i32
    return %c0_i32, %c0_i32_0 : i32, i32
  }
  func.func @transform_3(%arg0: i32) -> (i32, i32, i32) {
    %c0_i32 = arith.constant 0 : i32
    %c0_i32_0 = arith.constant 0 : i32
    %c0_i32_1 = arith.constant 0 : i32
    return %arg0, %c0_i32, %c0_i32_0 : i32, i32, i32
  }
}

</mosaic_0001>

<bundles_post_ra>
// kernel: tile.8
= control target key start
LH: loop header
LB: loop body
LE: loop exit
PB: predicated region body
PF: predicated region fallthrough
CT: control target
= control target key end

     0   :  { %s22_s0 = inlined_call_operand.vmem [shape: f32[16], index: 0, kind: input, shape index: {}]   ;;  %s23_s1 = inlined_call_operand.vmem [shape: f32[8,16], index: 1, kind: output, shape index: {}]  }
   0x1   :  { %v4_v0 = vld [vmem:[%s22_s0] ss:$0 sm:$0xff] }
   0x2   :  { %5 = vst [vmem:[%s23_s1] sm:$0xff] %v4_v0 }

// kernel: tile.9
= control target key start
LH: loop header
LB: loop body
LE: loop exit
PB: predicated region body
PF: predicated region fallthrough
CT: control target
= control target key end

     0   :  { %s67_s10 = smov 112   ;;  %s68_s11 = smov 80   ;;  %vm3_vm0 = vcmask 130048   ;;  %vm9_vm1 = vcmask 1048448   ;;  %vm15_vm2 = vcmask 917248   ;;  %vm21_vm3 = vcmask 786048   ;;  %s111_s0 = inlined_call_operand.vmem [shape: f32[8,16], index: 0, kind: input, shape index: {}]   ;;  %s112_s1 = inlined_call_operand.vmem [shape: f32[1,128], index: 1, kind: output, shape index: {}]  }
   0x1   :  { %v53_v0 = vld [vmem:[%s111_s0 + $0x7] sm:$0x1]   ;;  %v55_v1 = vld [vmem:[%s111_s0 + $0x5] sm:$0x1]   ;;  %v54_v2 = vld [vmem:[%s111_s0 + $0x6] sm:$0x1]  }
   0x2   :  { %7 = vrot.lane.b32.xlu0 %v53_v0, %s67_s10  ;;  %19 = vrot.lane.b32.xlu1 %v55_v1, %s68_s11  ;;  %v56_v3 = vld [vmem:[%s111_s0 + $0x4] sm:$0x1]   ;;  %v2_v4 = vld [vmem:[%s111_s0] sm:$0x1]   ;;  %s69_s18 = smov 96   ;;  %s70_s19 = smov 64  }
   0x3   :  { %4 = vst.msk [vmem:[#allocation0] sm:$0x1] %vm3_vm0, %v2_v4   ;;  %v57_v5 = vld [vmem:[%s111_s0 + $0x3] sm:$0x1]   ;;  %v58_v6 = vld [vmem:[%s111_s0 + $0x2] sm:$0x1]  }
   0x4   :  { %s71_s24 = smov 48   ;;  %s72_s25 = smov 32   ;;  %v59_v7 = vld [vmem:[%s111_s0 + $0x1] sm:$0x1]   ;;  %vm27_vm4 = vcmask 654848   ;;  %vm33_vm5 = vcmask 523648  }
   0x5   :  { %s73_s0 = smov 16   ;;  %vm39_vm6 = vcmask 392448   ;;  %vm45_vm7 = vcmask 261248  }
   0x6   :  { %13 = vrot.lane.b32.xlu0 %v54_v2, %s69_s18  ;;  %25 = vrot.lane.b32.xlu1 %v56_v3, %s70_s19 }
   0xa   :  { %31 = vrot.lane.b32.xlu0 %v57_v5, %s71_s24  ;;  %37 = vrot.lane.b32.xlu1 %v58_v6, %s72_s25 }
   0xe   :  { %43 = vrot.lane.b32.xlu0 %v59_v7, %s73_s0 }
  0x74   :  { %v8_v8 = vpop.permute.xlu0 %7   ;;  %v20_v9 = vpop.permute.xlu1 %19  }
  0x75   :  { %10 = vst.msk [vmem:[#allocation0] sm:$0x1] %vm9_vm1, %v8_v8  }
  0x78   :  { %v14_v10 = vpop.permute.xlu0 %13   ;;  %v26_v11 = vpop.permute.xlu1 %25  }
  0x79   :  { %16 = vst.msk [vmem:[#allocation0] sm:$0x1] %vm15_vm2, %v14_v10  }
  0x7a   :  { %22 = vst.msk [vmem:[#allocation0] sm:$0x1] %vm21_vm3, %v20_v9  }
  0x7b   :  { %28 = vst.msk [vmem:[#allocation0] sm:$0x1] %vm27_vm4, %v26_v11  }
  0x7c   :  { %v32_v12 = vpop.permute.xlu0 %31   ;;  %v38_v13 = vpop.permute.xlu1 %37  }
  0x7d   :  { %34 = vst.msk [vmem:[#allocation0] sm:$0x1] %vm33_vm5, %v32_v12  }
  0x7e   :  { %40 = vst.msk [vmem:[#allocation0] sm:$0x1] %vm39_vm6, %v38_v13  }
  0x80   :  { %v44_v14 = vpop.permute.xlu0 %43  }
  0x81   :  { %46 = vst.msk [vmem:[#allocation0] sm:$0x1] %vm45_vm7, %v44_v14  }
  0x88   :  { %v50_v15 = vld [vmem:[#allocation0] sm:$0x1] }
  0x89   :  { %52 = vst [vmem:[%s112_s1] sm:$0x1] %v50_v15 }

// kernel: conv2d_gelu_pallas.1
= control target key start
LH: loop header
LB: loop body
LE: loop exit
PB: predicated region body
PF: predicated region fallthrough
CT: control target
= control target key end

     0   :  { %s1038_s12 = smov 0   ;;  %s1122_s0 = inlined_call_operand.vmem [shape: f32[2,16,16], index: 0, kind: input, shape index: {}]   ;;  %s1123_s1 = inlined_call_operand.vmem [shape: f32[4,16,128], index: 1, kind: input, shape index: {}]   ;;  %s1124_s2 = inlined_call_operand.vmem [shape: f32[1,128], index: 2, kind: input, shape index: {}]   ;;  %s1125_s3 = inlined_call_operand.vmem [shape: f32[2,8,128], index: 3, kind: output, shape index: {}]  }
   0x1 LB: > { %s860_s13 = sadd.s32 4294967295, %s1013_s12   ;;  %p864_p0 = scmp.ge.s32.totalorder %s1013_s12, 1  ;;  %s1013_s12 = sphi %s1038_s12, %s13_s12  }
   0x2   : > { %p137_p1 = scmp.lt.s32.totalorder %s1013_s12, 3 }
   0x4   : > { %p138_p2 = pnand %p864_p0, %p137_p1 }
   0x5   : > { %p160_p3 = scmp.lt.s32.totalorder (!%p138_p2), %s860_s13, 1  ;;  %v171_v0 = vlaneseq (!%p138_p2)  ;;  %v1015_v1 = vmov (!%p138_p2), 0.0|0.0   ;;  %vm1016_vm0 = vmmov (!%p138_p2), 0   ;;  %v1017_v2 = vmov (!%p138_p2), 0.0   ;;  %v872_v6 = vld [vmem:[%s1123_s1 + $0x10] sm:$0xff] (!%p138_p2)  ;;  %v873_v7 = vld [vmem:[%s1123_s1 + $0x18] sm:$0xff] (!%p138_p2) }
   0x6   : > { %141 = sbr.rel (%p138_p2) target bundleno = 694 (0x2b6), region = 32  ;;  %970 = vmatprep.subr.bf16.mxu0 (!%p138_p2), %v1015_v1  ;;  %973 = vmatprep.subr.bf16.mxu1 (!%p138_p2), %v1015_v1  ;;  %v254_v8 = vld [vmem:[%s1123_s1] sm:$0xff] (!%p138_p2)  ;;  %v255_v12 = vld [vmem:[%s1123_s1 + $0x8] sm:$0xff] (!%p138_p2)  ;;  %vm180_vm3 = vcmask (!%p138_p2), 130048   ;;  %v977_v16 = vpack.c.bf16 (!%p138_p2), %v873_v7, %v872_v6  ;;  %v883_v29 = vld [vmem:[%s1123_s1 + $0x30] sm:$0xff] (!%p138_p2) }
   0x7   : > { %918 = vmatprep.mubr.msk.f32.mxu0 (!%p138_p2), %vm1016_vm0, %v1017_v2  ;;  %925 = vmatprep.mubr.msk.f32.mxu1 (!%p138_p2), %vm1016_vm0, %v1017_v2  ;;  %v172_v3 = vshrl.u32 (!%p138_p2), %v171_v0, 7  ;;  %v174_v4 = vand.u32 (!%p138_p2), 127, %v171_v0  ;;  %v980_v17 = vpack.c.bf16 (!%p138_p2), %v255_v12, %v254_v8  ;;  %v878_v26 = vld [vmem:[%s1123_s1 + $0x20] sm:$0xff] (!%p138_p2)  ;;  %v879_v27 = vld [vmem:[%s1123_s1 + $0x28] sm:$0xff] (!%p138_p2)  ;;  %v884_v30 = vld [vmem:[%s1123_s1 + $0x38] sm:$0xff] (!%p138_p2) }
   0x8   : > { %v986_v28 = vpack.c.bf16 (!%p138_p2), %v879_v27, %v878_v26  ;;  %v992_v36 = vpack.c.bf16 (!%p138_p2), %v884_v30, %v883_v29  ;;  %v886_v45 = vld [vmem:[%s1124_s2] ss:$0 sm:$0xff] (!%p138_p2) }
   0x9   : > { %v175_v5 = vmul.u32 (!%p138_p2), 2, %v172_v3 }
   0xb   : > { %v176_v11 = vadd.s32 (!%p138_p2), 4294967295, %v175_v5  ;;  %vm256_vm1 = vcmp.eq.s32.totalorder (!%p138_p2), %v174_v4, %v175_v5  ;;  %v481_v18 = vadd.s32 (!%p138_p2), 1, %v175_v5  ;;  %v635_v19 = vadd.s32 (!%p138_p2), 2, %v175_v5 }
   0xc   : > { %v870_v15 = vsel (!%p138_p2), %vm256_vm1, 1.0, %v1017_v2 }
   0xd   : > { %s1127_s13 = smov (!%p160_p3, %s860_s13), 1  ;;  %vm177_vm2 = vcmp.eq.s32.totalorder %v174_v4, %v176_v11  ;;  %vm482_vm4 = vcmp.eq.s32.totalorder %v174_v4, %v481_v18  ;;  %vm636_vm5 = vcmp.eq.s32.totalorder %v174_v4, %v635_v19 }
   0xe   : > { %s889_s14 = sshll.u32 %s1127_s13, 4  ;;  %v868_v14 = vsel %vm177_vm2, 1.0, %v1017_v2  ;;  %v876_v24 = vsel %vm482_vm4, 1.0, %v1017_v2  ;;  %v881_v25 = vsel %vm636_vm5, 1.0, %v1017_v2  ;;  %s867_s9 = sshll.u32 %s1127_s13, 3 }
   0xf   : > { %s164_s17 = scalar_lea.vmem %s1122_s0, %s889_s14  ;;  %s168_s14 = scalar_lea.vmem %s1125_s3, %s867_s9 }
  0x10   : > { %v169_v9 = vld [vmem:[%s164_s17] sm:$0xff]  ;;  %v170_v10 = vld [vmem:[%s164_s17 + $0x8] sm:$0xff] }
  0x11   : > { %v971_v13 = vpack.c.bf16 %v170_v10, %v169_v9 }
  0x13   : > { %972 = vmatpush3.bf16.msra.mxu0 %v971_v13  ;;  %975 = vmatpush3.bf16.msra.mxu1 %v971_v13 }
  0x14   : > { %976 = vmatprep.subr.bf16.mxu0 %v1015_v1  ;;  %979 = vmatprep.subr.bf16.mxu1 %v1015_v1 }
  0x16   : > { %919 = vmatmul.mubr.msk.f32.vlgmr.msra.gmra.mrb[0].mxu0 %vm180_vm3, %v868_v14  ;;  %926 = vmatmul.mubr.msk.f32.vlgmr.msra.gmra.mrb[0].mxu1 %vm180_vm3, %v870_v15 }
  0x17   : > { %978 = vmatpush3.bf16.msra.mxu0 %v977_v16  ;;  %981 = vmatpush3.bf16.msra.mxu1 %v980_v17 }
  0x18   : > { %932 = vmatprep.mubr.msk.f32.mxu0 %vm1016_vm0, %v1017_v2  ;;  %939 = vmatprep.mubr.msk.f32.mxu1 %vm1016_vm0, %v1017_v2 }
  0x19   : > { %982 = vmatprep.subr.bf16.mxu0 %v1015_v1  ;;  %985 = vmatprep.subr.bf16.mxu1 %v1015_v1 }
  0xe9   : > { %v250_v20 = vpop.f32.mrb[0].mxu0  ;;  %v328_v21 = vpop.f32.mrb[0].mxu1 }
  0xea   : > { %v927_v22 = vpop.f32.mrb[1].mxu1  ;;  %933 = vmatmul.mubr.msk.f32.vlgmr.msra.gmra.mrb[2].mxu0 %vm180_vm3, %v328_v21  ;;  %940 = vmatmul.mubr.msk.f32.vlgmr.msra.gmra.mrb[2].mxu1 %vm180_vm3, %v250_v20  ;;  %v920_v23 = vpop.f32.mrb[1].mxu0 }
  0xeb   : > { %984 = vmatpush3.bf16.msra.mxu0 %v971_v13  ;;  %946 = vmatprep.mubr.msk.f32.mxu0 %vm1016_vm0, %v1017_v2 }
  0xec   : > { %988 = vmatprep.subr.bf16.mxu0 %v1015_v1  ;;  %953 = vmatprep.mubr.msk.f32.mxu1 %vm1016_vm0, %v1017_v2 }
  0xed   : > { %987 = vmatpush3.bf16.msra.mxu1 %v986_v28 }
  0xee   : > { %947 = vmatmul.mubr.msk.f32.vlgmr.msra.gmra.mrb[4].mxu0 %vm180_vm3, %v876_v24  ;;  %991 = vmatprep.subr.bf16.mxu1 %v1015_v1 }
  0xef   : > { %990 = vmatpush3.bf16.msra.mxu0 %v971_v13  ;;  %960 = vmatprep.mubr.msk.f32.mxu0 %vm1016_vm0, %v1017_v2 }
  0xf2   : > { %961 = vmatmul.mubr.msk.f32.vlgmr.msra.gmra.mrb[6].mxu0 %vm180_vm3, %v881_v25 }
 0x1bd   : > { %v404_v31 = vpop.f32.mrb[2].mxu0  ;;  %v477_v32 = vpop.f32.mrb[2].mxu1 }
 0x1be   : > { %v478_v33 = vadd.f32 %v477_v32, %v404_v31  ;;  %v934_v34 = vpop.f32.mrb[3].mxu0  ;;  %v941_v35 = vpop.f32.mrb[3].mxu1 }
 0x1c1   : > { %v554_v37 = vpop.f32.mrb[4].mxu0 }
 0x1c2   : > { %v948_v38 = vpop.f32.mrb[5].mxu0  ;;  %954 = vmatmul.mubr.msk.f32.vlgmr.msra.gmra.mrb[4].mxu1 %vm180_vm3, %v554_v37 }
 0x1c3   : > { %993 = vmatpush3.bf16.msra.mxu1 %v992_v36  ;;  %967 = vmatprep.mubr.msk.f32.mxu1 %vm1016_vm0, %v1017_v2 }
 0x1c5   : > { %v708_v39 = vpop.f32.mrb[6].mxu0 }
 0x1c6   : > { %v962_v40 = vpop.f32.mrb[7].mxu0  ;;  %968 = vmatmul.mubr.msk.f32.vlgmr.msra.gmra.mrb[6].mxu1 %vm180_vm3, %v708_v39 }
 0x295   : > { %v630_v41 = vpop.f32.mrb[4].mxu1 }
 0x296   : > { %v634_v42 = vadd.f32 %v630_v41, %v478_v33  ;;  %v955_v43 = vpop.f32.mrb[5].mxu1 }
 0x299   : > { %v784_v44 = vpop.f32.mrb[6].mxu1 }
 0x29a   : > { %v788_v46 = vadd.f32 %v784_v44, %v634_v42  ;;  %v969_v47 = vpop.f32.mrb[7].mxu1 }
 0x29c   : > { %v796_v48 = vadd.f32 %v886_v45, %v788_v46 }
 0x29e   : > { %v798_v49 = vmul.f32 %v796_v48, %v796_v48  ;;  %v797_v51 = vmul.f32 0.7978846, %v796_v48  ;;  %v802_v55 = vmul.f32 0.5, %v796_v48 }
 0x2a0   : > { %v799_v50 = vmul.f32 %v798_v49, %v796_v48 }
 0x2a2   : > { %v800_v52 = vmul.f32 0.035677407, %v799_v50 }
 0x2a4   : > { %v801_v53 = vadd.f32 %v800_v52, %v797_v51 }
 0x2a6   : > { %1005 = vtanh.f32 %v801_v53 }
 0x2b0   : > { %v1006_v54 = vpop.eup %1005 }
 0x2b1   : > { %v804_v56 = vadd.f32 1.0, %v1006_v54 }
 0x2b3   : > { %v805_v57 = vmul.f32 %v804_v56, %v802_v55 }
 0x2b5   : > { %806 = vst [vmem:[%s168_s14] sm:$0xff] %v805_v57 }
 0x2b6 PF: > { %s13_s12 = sadd.s32 1, %s1013_s12  }
 0x2b7   : > { %p10_p4 = scmp.ge.s32.totalorder %s13_s12, 4  }
 0x2b9   :  { %12 = sbr.rel (!%p10_p4) target bundleno = 1 (0x1), region = 65 }

</bundles_post_ra>
